<compile_context>
chip_gen: v5e
topology: v5e:2x2
jax: 0.10.0
libtpu: 0.0.40
codegen_flags: <defaults>
</compile_context>

<pallas_src>
from typing import NamedTuple, Optional

import jax
import jax.numpy as jnp
from jax.experimental import pallas as pl
from jax.experimental.pallas import tpu as pltpu


def _cdiv(a: int, b: int) -> int:
    return -(-a // b)


def _round_up(a: int, m: int) -> int:
    return _cdiv(a, m) * m


class FoldedParams(NamedTuple):
    w_cat: jax.Array   # (D_src, HALF + CPAD)  [W_trans.T | W_cross], zero padded, compute dtype
    w3: jax.Array      # (HALF, CPAD) f32      rows<D_tgt / cols<C = rowsum(W_pred), else 0
    bias: jax.Array    # (8, HALF + CPAD) f32  row 0 = [b_trans | bias2_total], rows 1..7 = 0
    n_cls: int         # true number of classes C


def _latent_transition_kernel(x_ref, wcat_ref, w3_ref, bias_ref, out_ref):
    # x_ref   : (TB, D_src)          batch tile of source latents (bf16 or f32)
    # wcat_ref: (D_src, HALF+CPAD)   fused [W_trans.T | -2*W_trans.T @ Wp2.T], zero padded
    # w3_ref  : (HALF, CPAD) f32     broadcast rows of rowsum(W_pred)
    # bias_ref: (8, HALF+CPAD) f32   row 0 = [b_trans | bias2_total]
    # out_ref : (TB, C or CPAD)
    half = w3_ref.shape[0]

    x = x_ref[...]
    # Single fused MXU matmul: lanes [0, HALF) -> pre-bias lt, lanes [HALF, ...) -> pre-bias cross.
    y = jnp.dot(x, wcat_ref[...], preferred_element_type=jnp.float32)
    # One broadcast add applies b_trans to the lt half and bias2_total to the cross half.
    y = y + bias_ref[...][0:1, :]

    lt = y[:, :half]          # (TB, HALF) f32, zero in padded lanes
    cross = y[:, half:]       # (TB, CPAD) f32, already includes bias2_total

    # ||lt||^2 * rowsum(W_pred) as an MXU accumulate (no XLU cross-lane reduce, no (TB,1) bcast).
    out_full = jnp.dot(lt * lt, w3_ref[...], preferred_element_type=jnp.float32) + cross

    c_out = out_ref.shape[1]
    out_ref[...] = out_full[:, :c_out].astype(out_ref.dtype)


def fold_params(w_trans, b_trans, prototypes, w_pred, b_pred, *, compute_dtype=jnp.bfloat16):
    """One-time weight-only precompute (call once, not per forward)."""
    w_trans = jnp.asarray(w_trans, jnp.float32)                       # (D_tgt, D_src)
    b_trans = jnp.asarray(b_trans, jnp.float32).reshape(1, -1)        # (1, D_tgt)  (guards (D_tgt,) export)
    prototypes = jnp.asarray(prototypes, jnp.float32)                 # (P, D_tgt)
    w_pred = jnp.asarray(w_pred, jnp.float32)                         # (C, P)
    b_pred = jnp.asarray(b_pred, jnp.float32).reshape(1, -1)          # (1, C)

    d_tgt, d_src = w_trans.shape
    n_cls = w_pred.shape[0]
    half = _round_up(d_tgt, 128)
    c_pad = _round_up(n_cls, 128)

    w1_t = w_trans.T                                                  # (D_src, D_tgt)
    wp2 = w_pred @ prototypes                                         # (C, D_tgt)
    w_cross = -2.0 * (w1_t @ wp2.T)                                   # (D_src, C)
    wp_rowsum = jnp.sum(w_pred, axis=1)                               # (C,)
    p_sq = jnp.sum(prototypes * prototypes, axis=1)                   # (P,)
    bias2_total = (p_sq @ w_pred.T)[None, :] + b_pred - 2.0 * (b_trans @ wp2.T)   # (1, C)

    # Fused, lane-padded matmul weight: [ W_trans.T | W_cross ].
    w_cat = jnp.zeros((d_src, half + c_pad), jnp.float32)
    w_cat = w_cat.at[:, :d_tgt].set(w1_t)
    w_cat = w_cat.at[:, half:half + n_cls].set(w_cross)
    w_cat = w_cat.astype(compute_dtype)

    # Row-constant W3 turns the ||lt||^2 reduction into an MXU accumulate.
    w3 = jnp.zeros((half, c_pad), jnp.float32)
    w3 = w3.at[:d_tgt, :n_cls].set(jnp.broadcast_to(wp_rowsum[None, :], (d_tgt, n_cls)))

    # 8-row (sublane-aligned) bias buffer; row 0 holds both bias vectors side by side.
    bias = jnp.zeros((8, half + c_pad), jnp.float32)
    bias = bias.at[0, :d_tgt].set(b_trans[0])
    bias = bias.at[0, half:half + n_cls].set(bias2_total[0])

    return FoldedParams(w_cat=w_cat, w3=w3, bias=bias, n_cls=n_cls)


def latent_transition_forward(latent_source, params: FoldedParams, *,
                              batch_tile: int = 1024,
                              lane_dense_out: Optional[bool] = None):
    w_cat, w3, bias, n_cls = params
    d_src = w_cat.shape[0]
    half = w3.shape[0]
    c_pad = w3.shape[1]
    wide = w_cat.shape[1]
    assert wide == half + c_pad

    B, d_src_in = latent_source.shape
    assert d_src_in == d_src, "latent_source feature dim does not match folded params"

    # Balanced batch tiles; force >=2 grid steps for B > 16 so v7x's 2nd TensorCore participates.
    n_tiles = _cdiv(B, batch_tile)
    if B > 16:
        n_tiles = max(n_tiles, 2)
    tb = _round_up(max(_cdiv(B, n_tiles), 1), 8)
    grid_b = _cdiv(B, tb)
    b_pad = grid_b * tb

    # Lane-dense (padded-to-128) output for the latency-bound small/medium-B regime;
    # narrow output at very large B where padded writeback bytes would dominate HBM traffic.
    if lane_dense_out is None:
        lane_dense_out = B <= 4096
    c_out = c_pad if lane_dense_out else n_cls

    x = latent_source.astype(w_cat.dtype)     # bf16 (or f32) input stream
    if b_pad != B:
        x = jnp.pad(x, ((0, b_pad - B), (0, 0)))   # padded rows produce junk logits, sliced off

    # VMEM footprint estimate (double-buffered x/out blocks + resident constants).
    x_block = tb * _round_up(d_src, 128) * jnp.dtype(x.dtype).itemsize
    out_block = tb * _round_up(c_out, 128) * 4
    const_bytes = (w_cat.size * jnp.dtype(w_cat.dtype).itemsize + w3.size * 4 + bias.size * 4) * 2
    vmem_need = 2 * (x_block + out_block) + const_bytes + (2 << 20)
    vmem_limit = int(min(vmem_need, 100 << 20)) if vmem_need > (16 << 20) else None

    out = pl.pallas_call(
        _latent_transition_kernel,
        out_shape=jax.ShapeDtypeStruct((b_pad, c_out), jnp.float32),
        grid=(grid_b,),
        in_specs=[
            pl.BlockSpec((tb, d_src), lambda i: (i, 0)),
            pl.BlockSpec((d_src, wide), lambda i: (0, 0)),   # resident constants
            pl.BlockSpec((half, c_pad), lambda i: (0, 0)),   # resident constants
            pl.BlockSpec((8, wide), lambda i: (0, 0)),       # resident constants
        ],
        out_specs=pl.BlockSpec((tb, c_out), lambda i: (i, 0)),
        compiler_params=pltpu.CompilerParams(
            dimension_semantics=("parallel",),               # batch grid splits across TCs (v7x)
            vmem_limit_bytes=vmem_limit,
        ),
    )(x, w_cat, w3, bias)

    return out[:B, :n_cls]


def _reference(latent_source, w_trans, b_trans, prototypes, w_pred, b_pred):
    """Unfused pure-JAX f32 reference matching the original PyTorch forward."""
    lt = latent_source @ w_trans.T + b_trans.reshape(1, -1)
    d = (
        jnp.sum(lt * lt, axis=-1, keepdims=True)
        - 2.0 * (lt @ prototypes.T)
        + jnp.sum(prototypes * prototypes, axis=-1)[None, :]
    )
    return d @ w_pred.T + b_pred.reshape(1, -1)


if __name__ == "__main__":
    # Small synthetic dims consistent with the module:
    #   source latent dim = 32, target latent dim = 64, num prototypes = 16, num classes = 10
    D_SRC, D_TGT, P, C = 32, 64, 16, 10

    key = jax.random.PRNGKey(0)
    k_x1, k_x2, k_w1, k_b1, k_pr, k_wp, k_bp = jax.random.split(key, 7)

    # transition_model = nn.Linear(D_SRC, D_TGT)
    w_trans = jax.random.normal(k_w1, (D_TGT, D_SRC), dtype=jnp.float32) * 0.1
    b_trans = jax.random.normal(k_b1, (1, D_TGT), dtype=jnp.float32) * 0.1
    # target_model.proto_layer.prototypes : (P, D_TGT)
    prototypes = jax.random.normal(k_pr, (P, D_TGT), dtype=jnp.float32)
    # target_model.predictor = nn.Linear(P, C)
    w_pred = jax.random.normal(k_wp, (C, P), dtype=jnp.float32) * 0.1
    b_pred = jax.random.normal(k_bp, (1, C), dtype=jnp.float32) * 0.1

    # --- Check 1: f32 compute path, small batch, single tile (exact-fold correctness) ---
    B1 = 8
    x1 = jax.random.normal(k_x1, (B1, D_SRC), dtype=jnp.float32)
    params_f32 = fold_params(w_trans, b_trans, prototypes, w_pred, b_pred,
                             compute_dtype=jnp.float32)
    out1 = jax.block_until_ready(latent_transition_forward(x1, params_f32))
    ref1 = _reference(x1, w_trans, b_trans, prototypes, w_pred, b_pred)
    assert out1.shape == (B1, C)
    assert bool(jnp.allclose(out1, ref1, atol=1e-2, rtol=2e-3)), "f32 path mismatch vs reference"

    # --- Check 2: bf16 fast path, non-multiple batch, balanced multi-tile grid (>=2 steps) ---
    B2 = 300
    x2 = jax.random.normal(k_x2, (B2, D_SRC), dtype=jnp.float32)
    params_bf16 = fold_params(w_trans, b_trans, prototypes, w_pred, b_pred,
                              compute_dtype=jnp.bfloat16)
    out2 = jax.block_until_ready(latent_transition_forward(x2, params_bf16))
    ref2 = _reference(x2, w_trans, b_trans, prototypes, w_pred, b_pred)
    assert out2.shape == (B2, C)
    assert bool(jnp.allclose(out2, ref2, atol=3e-1, rtol=2e-2)), "bf16 path mismatch vs reference"

    print("KERNEL_OK")
</pallas_src>

<mosaic_0001>
module attributes {stable_mosaic.version = 11 : i64} {
  func.func @_latent_transition_kernel(%arg0: i32, %arg1: memref<8x32xf32, #tpu.memory_space<vmem>>, %arg2: memref<32x256xf32, #tpu.memory_space<vmem>>, %arg3: memref<128x128xf32, #tpu.memory_space<vmem>>, %arg4: memref<8x256xf32, #tpu.memory_space<vmem>>, %arg5: memref<8x128xf32, #tpu.memory_space<vmem>>) attributes {dimension_semantics = [#tpu.dimension_semantics<parallel>], iteration_bounds = array<i64: 1>, scalar_prefetch = 0 : i64, scratch_operands = 0 : i64, tpu.core_type = #tpu.core_type<tc>, window_params = [{transform_indices = @transform_0, window_bounds = array<i64: 8, 32>}, {pipeline_mode = #tpu.pipeline_mode<synchronous>, transform_indices = @transform_1, window_bounds = array<i64: 32, 256>}, {pipeline_mode = #tpu.pipeline_mode<synchronous>, transform_indices = @transform_2, window_bounds = array<i64: 128, 128>}, {pipeline_mode = #tpu.pipeline_mode<synchronous>, transform_indices = @transform_3, window_bounds = array<i64: 8, 256>}, {transform_indices = @transform_4, window_bounds = array<i64: 8, 128>}]} {
    %c0 = arith.constant 0 : index
    %c0_0 = arith.constant 0 : index
    %0 = vector.load %arg1[%c0, %c0_0] : memref<8x32xf32, #tpu.memory_space<vmem>>, vector<8x32xf32>
    %c0_1 = arith.constant 0 : index
    %c0_2 = arith.constant 0 : index
    %1 = vector.load %arg2[%c0_1, %c0_2] : memref<32x256xf32, #tpu.memory_space<vmem>>, vector<32x256xf32>
    %cst = arith.constant dense<0.000000e+00> : vector<8x256xf32>
    %2 = tpu.matmul %0, %1, %cst {dimension_numbers = #tpu.dot_dimension_numbers<[1], [0], [0], [1], [0, 0, 1, 1], [], []>} : vector<8x32xf32>, vector<32x256xf32>, vector<8x256xf32> -> vector<8x256xf32>
    %c0_3 = arith.constant 0 : index
    %c0_4 = arith.constant 0 : index
    %3 = vector.load %arg4[%c0_3, %c0_4] : memref<8x256xf32, #tpu.memory_space<vmem>>, vector<8x256xf32>
    %4 = vector.extract_strided_slice %3 {offsets = [0, 0], sizes = [1, 256], strides = [1, 1]} : vector<8x256xf32> to vector<1x256xf32>
    %5 = vector.broadcast %4 : vector<1x256xf32> to vector<8x256xf32>
    %6 = arith.addf %2, %5 : vector<8x256xf32>
    %7 = vector.extract_strided_slice %6 {offsets = [0, 0], sizes = [8, 128], strides = [1, 1]} : vector<8x256xf32> to vector<8x128xf32>
    %8 = vector.extract_strided_slice %6 {offsets = [0, 128], sizes = [8, 128], strides = [1, 1]} : vector<8x256xf32> to vector<8x128xf32>
    %9 = arith.mulf %7, %7 : vector<8x128xf32>
    %c0_5 = arith.constant 0 : index
    %c0_6 = arith.constant 0 : index
    %10 = vector.load %arg3[%c0_5, %c0_6] : memref<128x128xf32, #tpu.memory_space<vmem>>, vector<128x128xf32>
    %cst_7 = arith.constant dense<0.000000e+00> : vector<8x128xf32>
    %11 = tpu.matmul %9, %10, %cst_7 {dimension_numbers = #tpu.dot_dimension_numbers<[1], [0], [0], [1], [0, 0, 1, 1], [], []>} : vector<8x128xf32>, vector<128x128xf32>, vector<8x128xf32> -> vector<8x128xf32>
    %12 = arith.addf %11, %8 : vector<8x128xf32>
    %c0_8 = arith.constant 0 : index
    %c0_9 = arith.constant 0 : index
    %13 = vector.load %arg5[%c0_8, %c0_9] : memref<8x128xf32, #tpu.memory_space<vmem>>, vector<8x128xf32>
    tpu.vector_store %arg5[%c0_8, %c0_9], %12 {strides = array<i32>} : memref<8x128xf32, #tpu.memory_space<vmem>>, vector<8x128xf32>,
    return
  }
  func.func @transform_0(%arg0: i32) -> (i32, i32) {
    %c0_i32 = arith.constant 0 : i32
    %c0_i32_0 = arith.constant 0 : i32
    return %arg0, %c0_i32 : i32, i32
  }
  func.func @transform_1(%arg0: i32) -> (i32, i32) {
    %c0_i32 = arith.constant 0 : i32
    %c0_i32_0 = arith.constant 0 : i32
    %c0_i32_1 = arith.constant 0 : i32
    return %c0_i32, %c0_i32_0 : i32, i32
  }
  func.func @transform_2(%arg0: i32) -> (i32, i32) {
    %c0_i32 = arith.constant 0 : i32
    %c0_i32_0 = arith.constant 0 : i32
    %c0_i32_1 = arith.constant 0 : i32
    return %c0_i32, %c0_i32_0 : i32, i32
  }
  func.func @transform_3(%arg0: i32) -> (i32, i32) {
    %c0_i32 = arith.constant 0 : i32
    %c0_i32_0 = arith.constant 0 : i32
    %c0_i32_1 = arith.constant 0 : i32
    return %c0_i32, %c0_i32_0 : i32, i32
  }
  func.func @transform_4(%arg0: i32) -> (i32, i32) {
    %c0_i32 = arith.constant 0 : i32
    %c0_i32_0 = arith.constant 0 : i32
    return %arg0, %c0_i32 : i32, i32
  }
}

</mosaic_0001>

<bundles_post_ra>
// kernel: tpu_custom_call.1
= control target key start
LH: loop header
LB: loop body
LE: loop exit
PB: predicated region body
PF: predicated region fallthrough
CT: control target
= control target key end

     0   :  { %9 = vsyncpa [#allocation3], 0  ;;  %s381_s0 = inlined_call_operand.hbm [shape: f32[8,32], index: 0, kind: input, shape index: {}]   ;;  %s382_s1 = inlined_call_operand.hbm [shape: f32[32,256], index: 1, kind: input, shape index: {}]   ;;  %s383_s2 = inlined_call_operand.hbm [shape: f32[128,128], index: 2, kind: input, shape index: {}]   ;;  %s384_s3 = inlined_call_operand.hbm [shape: f32[8,256], index: 3, kind: input, shape index: {}]   ;;  %s385_s4 = inlined_call_operand.hbm [shape: f32[8,128], index: 4, kind: output, shape index: {}]  }
   0x1   :  { %10 = vsyncpa [#allocation6], 0 }
   0x2   :  { %11 = vsyncpa [#allocation9], 0  ;;  %s28_s17 = sshll.u32 %s382_s1, 4  ;;  %s29_s17 = int_to_ptr.hbm [resolvable:$true] %s28_s17 }
   0x3   :  { %12 = vsyncpa [#allocation4], 0  ;;  %s330_s18 = smov [#allocation5]   ;;  %s18_s22 = sshll.u32 %s381_s0, 4  ;;  %s19_s22 = int_to_ptr.hbm [resolvable:$true] %s18_s22 }
   0x4   :  { %s30_s19 = sshll.u32 %s330_s18, 4  ;;  %s331_s23 = smov 256   ;;  %s31_s19 = int_to_ptr.vmem [resolvable:$true] %s30_s19 }
   0x5   :  { %s332_s24 = smov 16   ;;  %s333_s25 = smov [#allocation2]  }
   0x6   :  { %36 = dma.hbm_to_vmem [thread:$0]  %s29_s17, 1024, %s31_s19, [#allocation6], %s331_s23, %s331_s23, %s332_s24  }
   0x7   :  { %s20_s26 = sshll.u32 %s333_s25, 4  ;;  %s41_s29 = sshll.u32 %s383_s2, 4  ;;  %s21_s26 = int_to_ptr.vmem [resolvable:$true] %s20_s26  ;;  %s42_s29 = int_to_ptr.hbm [resolvable:$true] %s41_s29 }
   0x8   :  { %23 = dma.hbm_to_vmem [thread:$0]  %s19_s22, 128, %s21_s26, [#allocation3]  }
   0x9   :  { %s334_s1 = smov [#allocation7]   ;;  %s55_s0 = sshll.u32 %s384_s3, 4  ;;  %s56_s0 = int_to_ptr.hbm [resolvable:$true] %s55_s0 }
   0xa   :  { %s43_s30 = sshll.u32 %s334_s1, 4  ;;  %s335_s7 = smov 128   ;;  %s44_s30 = int_to_ptr.vmem [resolvable:$true] %s43_s30 }
   0xb   :  { %s336_s8 = smov 8   ;;  %s337_s9 = smov [#allocation8]  }
   0xc   :  { %49 = dma.hbm_to_vmem [thread:$0]  %s42_s29, 2048, %s44_s30, [#allocation6], %s335_s7, %s335_s7, %s336_s8  }
   0xd   :  { %s57_s10 = sshll.u32 %s337_s9, 4  ;;  %s58_s10 = int_to_ptr.vmem [resolvable:$true] %s57_s10 }
   0xe   :  { %60 = dma.hbm_to_vmem [thread:$0]  %s56_s0, 256, %s58_s10, [#allocation9]  }
   0xf   :  { %322 = dma.done.wait [#allocation3], 128  }
  0x10   :  { %323 = vsyncadd [#allocation3], 4294967168 }
  0x11   :  { %324 = dma.done.wait [#allocation6], 3072  }
  0x12   :  { %325 = vsyncadd [#allocation6], 4294964224 }
  0x13   :  { %326 = dma.done.wait [#allocation9], 256  }
  0x14   :  { %327 = vsyncadd [#allocation9], 4294967040  ;;  %v84_v0 = vld [vmem:[#allocation5 + $0x30] sm:$0xff]  ;;  %v82_v1 = vld [vmem:[#allocation5 + $0x20] sm:$0xff]  ;;  %vm90_vm0 = vcmask 261120   ;;  %s338_s2 = smov [#allocation10]  }
  0x15   :  { %106 = vmatpush.msra.mxu0 %v84_v0  ;;  %v150_v2 = vld [vmem:[#allocation7 + $0x78] sm:$0xff]  ;;  %v80_v3 = vld [vmem:[#allocation5 + $0x10] sm:$0xff]  ;;  %v148_v5 = vld [vmem:[#allocation7 + $0x68] sm:$0xff]  ;;  %s177_s3 = sshll.u32 %s338_s2, 4  ;;  %s179_s13 = sshll.u32 %s385_s4, 4  ;;  %s178_s3 = int_to_ptr.vmem [resolvable:$true] %s177_s3  ;;  %s180_s13 = int_to_ptr.hbm [resolvable:$true] %s179_s13 }
  0x16   :  { %151 = vmatpush.msra.mxu2 %v150_v2  ;;  %v149_v4 = vld [vmem:[#allocation7 + $0x70] sm:$0xff]  ;;  %v78_v6 = vld [vmem:[#allocation5] sm:$0xff]  ;;  %v77_v7 = vld [vmem:[#allocation2] sm:$0xff] }
  0x17   :  { %107 = vmatpush.msra.mxu0 %v82_v1  ;;  %v147_v8 = vld [vmem:[#allocation7 + $0x60] sm:$0xff]  ;;  %v146_v9 = vld [vmem:[#allocation7 + $0x58] sm:$0xff]  ;;  %v145_v10 = vld [vmem:[#allocation7 + $0x50] sm:$0xff] }
  0x18   :  { %152 = vmatpush.msra.mxu2 %v149_v4  ;;  %v144_v11 = vld [vmem:[#allocation7 + $0x48] sm:$0xff]  ;;  %v143_v12 = vld [vmem:[#allocation7 + $0x40] sm:$0xff]  ;;  %v142_v13 = vld [vmem:[#allocation7 + $0x38] sm:$0xff] }
  0x19   :  { %108 = vmatpush.msra.mxu0 %v80_v3  ;;  %v141_v14 = vld [vmem:[#allocation7 + $0x30] sm:$0xff]  ;;  %v140_v15 = vld [vmem:[#allocation7 + $0x28] sm:$0xff]  ;;  %v139_v16 = vld [vmem:[#allocation7 + $0x20] sm:$0xff] }
  0x1a   :  { %153 = vmatpush.msra.mxu2 %v148_v5  ;;  %v138_v17 = vld [vmem:[#allocation7 + $0x18] sm:$0xff]  ;;  %v137_v18 = vld [vmem:[#allocation7 + $0x10] sm:$0xff]  ;;  %v136_v20 = vld [vmem:[#allocation7 + $0x8] sm:$0xff] }
  0x1b   :  { %109 = vmatpush.msra.mxu0 %v78_v6  ;;  %v85_v19 = vld [vmem:[#allocation5 + $0x38] sm:$0xff]  ;;  %v83_v21 = vld [vmem:[#allocation5 + $0x28] sm:$0xff]  ;;  %v135_v22 = vld [vmem:[#allocation7] sm:$0xff] }
  0x1c   :  { %191 = vmatmul.msk.f32.vlgmr.msra.gmra.mxu0 %vm90_vm0, %v77_v7  ;;  %154 = vmatpush.msra.mxu2 %v147_v8  ;;  %v81_v23 = vld [vmem:[#allocation5 + $0x18] sm:$0xff]  ;;  %v79_v24 = vld [vmem:[#allocation5 + $0x8] sm:$0xff]  ;;  %v86_v25 = vld [vmem:[#allocation8] sm:$0xff] }
  0x1d   :  { %126 = vmatpush.msra.mxu1 %v85_v19  ;;  %v88_v26 = vperm.slane %v86_v25, 0  ;;  %v87_v30 = vld [vmem:[#allocation8 + $0x8] sm:$0xff] }
  0x1e   :  { %155 = vmatpush.msra.mxu2 %v146_v9  ;;  %v89_v31 = vperm.slane %v87_v30, 0 }
  0x1f   :  { %127 = vmatpush.msra.mxu1 %v83_v21 }
  0x20   :  { %156 = vmatpush.msra.mxu2 %v145_v10 }
  0x21   :  { %128 = vmatpush.msra.mxu1 %v81_v23 }
  0x22   :  { %157 = vmatpush.msra.mxu2 %v144_v11 }
  0x23   :  { %129 = vmatpush.msra.mxu1 %v79_v24 }
  0x24   :  { %158 = vmatpush.msra.mxu2 %v143_v12  ;;  %192 = vmatmul.msk.f32.vlgmr.msra.gmra.mxu1 %vm90_vm0, %v77_v7 }
  0x26   :  { %159 = vmatpush.msra.mxu2 %v142_v13 }
  0x28   :  { %160 = vmatpush.msra.mxu2 %v141_v14 }
  0x2a   :  { %161 = vmatpush.msra.mxu2 %v140_v15 }
  0x2c   :  { %162 = vmatpush.msra.mxu2 %v139_v16 }
  0x2e   :  { %163 = vmatpush.msra.mxu2 %v138_v17 }
  0x30   :  { %164 = vmatpush.msra.mxu2 %v137_v18 }
  0x32   :  { %165 = vmatpush.msra.mxu2 %v136_v20 }
  0x34   :  { %166 = vmatpush.msra.mxu2 %v135_v22 }
  0x99   :  { %v111_v27 = vpop.f32.mrf.mxu0 }
  0x9a   :  { %v112_v28 = vadd.f32 %v111_v27, %v88_v26 }
  0x9c   :  { %v134_v29 = vmul.f32 %v112_v28, %v112_v28 }
  0x9e   :  { %167 = vmatmul.f32.vlgmr.msra.gmra.mxu2 %v134_v29 }
  0xa1   :  { %v131_v32 = vpop.f32.mrf.mxu1 }
  0xa2   :  { %v132_v33 = vadd.f32 %v131_v32, %v89_v31 }
 0x121   :  { %v168_v34 = vpop.f32.mrf.mxu2 }
 0x122   :  { %v169_v35 = vadd.f32 %v168_v34, %v132_v33 }
 0x124   :  { %171 = vst [vmem:[#allocation10] sm:$0xff] %v169_v35 }
 0x125   :  { %182 = dma.vmem_to_hbm [thread:$0]  %s178_s3, 128, %s180_s13, [#allocation4]  }
 0x126   :  { %328 = dma.done.wait [#allocation4], 128  }
 0x127   :  { %329 = vsyncadd [#allocation4], 4294967168 }
 0x128   :  { %187 = vsyncpa [#allocation3], 1 }
 0x129   :  { %188 = vsyncpa [#allocation6], 1 }
 0x12a   :  { %189 = vsyncpa [#allocation9], 1 }
 0x12b   :  { %190 = vsyncpa [#allocation4], 1 }

</bundles_post_ra>
